<compile_context>
chip_gen: v6e
topology: v6e:2x2x1
jax: 0.10.0
libtpu: 0.0.40
codegen_flags: <defaults>
</compile_context>

<pallas_src>
import jax
import jax.numpy as jnp
from jax.experimental import pallas as pl
from jax.experimental.pallas import tpu as pltpu


def _lerp_kernel(frac_ref, lo_ref, hi_ref, out_ref):
    """One grid step = one (s_tile, n_tile) slab of the flattened output.

    frac_ref: VMEM (s_tile, 1)       f32 interpolation fraction per query row
    lo_ref:   VMEM (s_tile, n_tile)  left-knot values  xt_flat[seg[s], :]
    hi_ref:   VMEM (s_tile, n_tile)  right-knot values xt_flat[seg[s]+1, :]
    out_ref:  VMEM (s_tile, n_tile)  interpolated values
    """
    f = frac_ref[...]                            # (s_tile, 1) f32, lane-broadcast
    lo = lo_ref[...].astype(jnp.float32)
    hi = hi_ref[...].astype(jnp.float32)
    out_ref[...] = ((1.0 - f) * lo + f * hi).astype(out_ref.dtype)


def endpoint_spline_forward(t, xt_btd, query_t, *, s_tile=None, n_tile=None):
    """t: (T,), xt_btd: (B, T, D), query_t: (S,)  ->  yt: (B, S, D)."""
    B, T, D = xt_btd.shape
    (S,) = query_t.shape
    N = B * D

    t32 = t.astype(jnp.float32)
    q32 = query_t.astype(jnp.float32)

    # seg = clip(searchsorted(t, q, side='right') - 1, 0, T-2); frac unclipped
    # -> linear extrapolation outside [t[0], t[-1]], exact at the knots
    # (knot times are strictly increasing, as asserted by the module).
    seg = jnp.clip(jnp.searchsorted(t32, q32, side="right") - 1, 0, T - 2)
    t_lo = t32[seg]
    t_hi = t32[seg + 1]
    frac = ((q32 - t_lo) / (t_hi - t_lo)).reshape(S, 1)          # (S, 1) f32

    # The module stores knots internally as (T, B, D); flatten to (T, B*D) so
    # batch*feature sits on lanes, then gather the two taps per query once in
    # the wrapper (layout plumbing; keeps the kernel a pure streaming VPU op).
    xt_flat = jnp.transpose(xt_btd, (1, 0, 2)).reshape(T, N)     # (T, N)
    lo = xt_flat[seg]                                            # (S, N)
    hi = xt_flat[seg + 1]                                        # (S, N)

    # Tile sizes: one block when the problem is small (single grid step, zero
    # extra per-step overhead); otherwise cap at 512 x 1024 so the
    # double-buffered working set stays well inside every chip's scoped VMEM.
    if s_tile is None:
        s_tile = S if S <= 512 else 512          # full S, or multiple of 8
    if n_tile is None:
        n_tile = N if N <= 1024 else 1024        # full N, or multiple of 128

    grid = (pl.cdiv(S, s_tile), pl.cdiv(N, n_tile))

    out_flat = pl.pallas_call(
        _lerp_kernel,
        out_shape=jax.ShapeDtypeStruct((S, N), xt_btd.dtype),
        grid=grid,
        in_specs=[
            # frac only changes with the query-tile axis.
            pl.BlockSpec((s_tile, 1), lambda si, ni: (si, 0)),
            pl.BlockSpec((s_tile, n_tile), lambda si, ni: (si, ni)),
            pl.BlockSpec((s_tile, n_tile), lambda si, ni: (si, ni)),
        ],
        out_specs=pl.BlockSpec((s_tile, n_tile), lambda si, ni: (si, ni)),
        compiler_params=pltpu.CompilerParams(
            dimension_semantics=("parallel", "parallel"),
            vmem_limit_bytes=32 << 20,
        ),
    )(frac, lo, hi)

    # (S, B*D) -> (B, S, D): back to the module's output layout.
    return jnp.transpose(out_flat.reshape(S, B, D), (1, 0, 2))


def _reference_forward(t, xt_btd, query_t):
    """Pure-JAX reference: per-(b, d) 1-D linear interpolation (in-range)."""
    def per_series(col):                                   # (T,) -> (S,)
        return jnp.interp(query_t, t, col)
    inner = jax.vmap(per_series, in_axes=1, out_axes=1)    # (T, D) -> (S, D)
    return jax.vmap(inner)(xt_btd)                         # (B, T, D) -> (B, S, D)


if __name__ == "__main__":
    # Small shapes consistent with the module: B batch paths, T knots (>2),
    # D state dims, S query times.
    B, T, D, S = 4, 8, 16, 8

    key = jax.random.PRNGKey(0)
    k_xt, _ = jax.random.split(key)

    # Deterministic "parameters": knot times and knot values in the module's
    # input layout (B, T, D); no checkpoint loading.
    t = jnp.linspace(0.0, 1.0, T, dtype=jnp.float32)                 # (T,)
    xt_btd = jax.random.normal(k_xt, (B, T, D), dtype=jnp.float32)   # (B, T, D)

    # Query times strictly inside the knot range (as in training).
    query_t = jnp.linspace(0.05, 0.95, S, dtype=jnp.float32)         # (S,)

    yt = endpoint_spline_forward(t, xt_btd, query_t)
    yt = jax.block_until_ready(yt)

    assert yt.shape == (B, S, D), yt.shape

    yt_ref = _reference_forward(t, xt_btd, query_t)
    if not jnp.allclose(yt, yt_ref, rtol=1e-5, atol=1e-5):
        raise AssertionError("Pallas spline output does not match reference")

    print("KERNEL_OK")
</pallas_src>

<mosaic_0001>
module attributes {stable_mosaic.version = 11 : i64} {
  func.func @_lerp_kernel(%arg0: i32, %arg1: i32, %arg2: memref<8x1xf32, #tpu.memory_space<vmem>>, %arg3: memref<8x64xf32, #tpu.memory_space<vmem>>, %arg4: memref<8x64xf32, #tpu.memory_space<vmem>>, %arg5: memref<8x64xf32, #tpu.memory_space<vmem>>) attributes {dimension_semantics = [#tpu.dimension_semantics<parallel>, #tpu.dimension_semantics<parallel>], iteration_bounds = array<i64: 1, 1>, scalar_prefetch = 0 : i64, scratch_operands = 0 : i64, tpu.core_type = #tpu.core_type<tc>, window_params = [{transform_indices = @transform_0, window_bounds = array<i64: 8, 1>}, {transform_indices = @transform_1, window_bounds = array<i64: 8, 64>}, {transform_indices = @transform_2, window_bounds = array<i64: 8, 64>}, {transform_indices = @transform_3, window_bounds = array<i64: 8, 64>}]} {
    %c0 = arith.constant 0 : index
    %c0_0 = arith.constant 0 : index
    %0 = vector.load %arg2[%c0, %c0_0] : memref<8x1xf32, #tpu.memory_space<vmem>>, vector<8x1xf32>
    %c0_1 = arith.constant 0 : index
    %c0_2 = arith.constant 0 : index
    %1 = vector.load %arg3[%c0_1, %c0_2] : memref<8x64xf32, #tpu.memory_space<vmem>>, vector<8x64xf32>
    %c0_3 = arith.constant 0 : index
    %c0_4 = arith.constant 0 : index
    %2 = vector.load %arg4[%c0_3, %c0_4] : memref<8x64xf32, #tpu.memory_space<vmem>>, vector<8x64xf32>
    %cst = arith.constant 1.000000e+00 : f32
    %3 = vector.broadcast %cst : f32 to vector<8x1xf32>
    %4 = arith.subf %3, %0 : vector<8x1xf32>
    %5 = vector.broadcast %4 : vector<8x1xf32> to vector<8x64xf32>
    %6 = arith.mulf %5, %1 : vector<8x64xf32>
    %7 = vector.broadcast %0 : vector<8x1xf32> to vector<8x64xf32>
    %8 = arith.mulf %7, %2 : vector<8x64xf32>
    %9 = arith.addf %6, %8 : vector<8x64xf32>
    %c0_5 = arith.constant 0 : index
    %c0_6 = arith.constant 0 : index
    %10 = vector.load %arg5[%c0_5, %c0_6] : memref<8x64xf32, #tpu.memory_space<vmem>>, vector<8x64xf32>
    tpu.vector_store %arg5[%c0_5, %c0_6], %9 {strides = array<i32>} : memref<8x64xf32, #tpu.memory_space<vmem>>, vector<8x64xf32>,
    return
  }
  func.func @transform_0(%arg0: i32, %arg1: i32) -> (i32, i32) {
    %c0_i32 = arith.constant 0 : i32
    %c0_i32_0 = arith.constant 0 : i32
    return %arg0, %c0_i32 : i32, i32
  }
  func.func @transform_1(%arg0: i32, %arg1: i32) -> (i32, i32) {
    %c0_i32 = arith.constant 0 : i32
    return %arg0, %arg1 : i32, i32
  }
  func.func @transform_2(%arg0: i32, %arg1: i32) -> (i32, i32) {
    %c0_i32 = arith.constant 0 : i32
    return %arg0, %arg1 : i32, i32
  }
  func.func @transform_3(%arg0: i32, %arg1: i32) -> (i32, i32) {
    %c0_i32 = arith.constant 0 : i32
    return %arg0, %arg1 : i32, i32
  }
}

</mosaic_0001>

<bundles_post_ra>
// kernel: tpu_custom_call.1
= control target key start
LH: loop header
LB: loop body
LE: loop exit
PB: predicated region body
PF: predicated region fallthrough
CT: control target
= control target key end

     0   :  { %8 = vsyncpa [#allocation3], 0  ;;  %s144_s0 = inlined_call_operand.vmem [shape: f32[8,1], index: 0, kind: input, shape index: {}]   ;;  %s145_s1 = inlined_call_operand.vmem [shape: f32[8,64], index: 1, kind: input, shape index: {}]   ;;  %s146_s2 = inlined_call_operand.hbm [shape: f32[8,64], index: 2, kind: input, shape index: {}]   ;;  %s147_s3 = inlined_call_operand.hbm [shape: f32[8,64], index: 3, kind: output, shape index: {}]  }
   0x1   :  { %9 = vsyncpa [#allocation4], 0  ;;  %s109_s12 = smov [#allocation2]  }
   0x2   :  { %s20_s13 = sshll.u32 %s109_s12, 4  ;;  %s21_s13 = int_to_ptr.vmem [resolvable:$true] %s20_s13 }
   0x3   :  { %s73_s14 = scalar_lea.vmem %s21_s13, 128  ;;  %p78_p1 = scmp.lt.s32.totalorder %s21_s13, %s21_s13 }
   0x4   :  { %p74_p0 = scmp.ne.s32.totalorder %s21_s13, %s73_s14  ;;  %p79_p2 = scmp.lt.s32.totalorder %s73_s14, %s73_s14 }
   0x6   :  { %p80_p3 = por %p79_p2, %p78_p1 }
   0x8   :  { %p81_p4 = pnand %p80_p3, %p74_p0 }
   0xa   :  { %84 = shalt.err (!%p81_p4)
}
   0xb   :  { %23 = dma.hbm_to_vmem [thread:$0]  %s146_s2, 128, %s21_s13, [#allocation3]  }
   0xc   :  { %105 = dma.done.wait [#allocation3], 128  }
   0xd   :  { %106 = vsyncadd [#allocation3], 4294967168  ;;  %v110_v0 = vmov 0   ;;  %v27_v1 = vld [vmem:[%s144_s0] sm:$0xff]  ;;  %s111_s21 = smov [#allocation5]   ;;  %vm44_vm0 = vcmask 523264  }
   0xe   :  { %64 = vset.pattern.permute.xlu0 %v110_v0  ;;  %v30_v2 = vsub.f32 1.0, %v27_v1  ;;  %v28_v4 = vld [vmem:[%s145_s1] sm:$0xff]  ;;  %s52_s2 = sshll.u32 %s111_s21, 4  ;;  %s53_s2 = int_to_ptr.vmem [resolvable:$true] %s52_s2 }
   0xf   :  { %v29_v5 = vld [vmem:[#allocation2] sm:$0xff]  ;;  %s85_s22 = scalar_lea.vmem %s53_s2, 128  ;;  %p90_p6 = scmp.lt.s32.totalorder %s53_s2, %s53_s2 }
  0x10   :  { %33 = vperm.xlu0 %64, %v30_v2   ;;  %p86_p5 = scmp.ne.s32.totalorder %s53_s2, %s85_s22  ;;  %p91_p7 = scmp.lt.s32.totalorder %s85_s22, %s85_s22 }
  0x12   :  { %p92_p8 = por %p91_p7, %p90_p6 }
  0x14   :  { %39 = vperm.xlu0 %64, %v27_v1   ;;  %p93_p9 = pnand %p92_p8, %p86_p5 }
  0x8b   :  { %v34_v3 = vpop.permute.xlu0 %33 }
  0x8c   :  { %v36_v7 = vmul.f32 %v34_v3, %v28_v4 }
  0x8f   :  { %v40_v6 = vpop.permute.xlu0 %39 }
  0x90   :  { %v42_v8 = vmul.f32 %v40_v6, %v29_v5 }
  0x92   :  { %v43_v9 = vadd.f32 %v42_v8, %v36_v7 }
  0x94   :  { %45 = vst.msk [vmem:[#allocation5] sm:$0xff] %vm44_vm0, %v43_v9 }
  0x95   :  { %96 = shalt.err (!%p93_p9)
}
  0x96   :  { %55 = dma.vmem_to_hbm [thread:$0]  %s53_s2, 128, %s147_s3, [#allocation4]  }
  0x97   :  { %107 = dma.done.wait [#allocation4], 128  }
  0x98   :  { %108 = vsyncadd [#allocation4], 4294967168 }
  0x99   :  { %59 = vsyncpa [#allocation3], 1 }
  0x9a   :  { %60 = vsyncpa [#allocation4], 1 }

</bundles_post_ra>
